<compile_context>
chip_gen: v7x
topology: tpu7x:2x2x1
jax: 0.10.0
libtpu: 0.0.40
codegen_flags: <defaults>
</compile_context>

<pallas_src>
import functools

import jax
import jax.numpy as jnp
from jax.experimental import pallas as pl
from jax.experimental.pallas import tpu as pltpu


def _round_up(x: int, m: int) -> int:
    return ((x + m - 1) // m) * m


def _sublane_pack(dtype) -> int:
    # Sublane packing of the vreg for the given element size.
    return {4: 8, 2: 16, 1: 32}.get(jnp.dtype(dtype).itemsize, 8)


def _vmem_budget_bytes() -> int:
    """Generation-aware VMEM budget (v7x: 64 MiB/TC; v5e/v6e: 128 MiB)."""
    cap = None
    try:
        cap = getattr(pltpu.get_tpu_info(), "vmem_capacity_bytes", None)
    except Exception:
        cap = None
    if cap is None:
        try:
            kind = jax.devices()[0].device_kind.lower()
        except Exception:
            kind = ""
        cap = (64 << 20) if "v7" in kind else (128 << 20)
    # Leave ~25% headroom for compiler scratch / pipeline bookkeeping,
    # and never ask for more than 96 MiB even on the big-VMEM generations.
    return min((int(cap) * 3) // 4, 96 << 20)


def prepare_decoder_params(weight, bias, *, param_dtype=jnp.bfloat16,
                           tn=512, tk=1024):
    """One-time parameter packing (done at init, never per forward call).

    weight: (dim_out, dim_in)  as stored by torch.nn.Linear
    bias:   (dim_out,)
    Returns a dict with the pre-transposed / cast / padded weight, padded bias
    (kept f32 — it is added in the f32 epilogue) and the static tiling info.
    """
    dim_out, dim_in = weight.shape
    assert bias.shape == (dim_out,)

    # Clamp weight-side tiles to the lane-aligned problem size.
    tk = min(tk, _round_up(dim_in, 128))
    tn = min(tn, _round_up(dim_out, 128))
    Kp, Np = _round_up(dim_in, tk), _round_up(dim_out, tn)

    weight_t = jnp.asarray(weight).T.astype(param_dtype)      # (dim_in, dim_out)
    weight_t_p = jnp.pad(weight_t, ((0, Kp - dim_in), (0, Np - dim_out)))
    bias_p = jnp.pad(jnp.asarray(bias, jnp.float32),
                     (0, Np - dim_out)).reshape(1, Np)

    # TODO(synk): add an fp8(e4m3) weight path with per-output-channel scales
    # folded into the bias epilogue for v7x, and an int8 per-channel path for
    # v5e/v6e (v7x MXU has no int support) — halves weight HBM traffic again.
    return dict(weight_t_p=weight_t_p, bias_p=bias_p,
                dim_in=dim_in, dim_out=dim_out, tk=tk, tn=tn)


def _linear_kernel(x_ref, wt_ref, b_ref, o_ref, acc_ref):
    """One (tm, tn) output tile; K (grid axis 2) is the serial reduction axis."""
    k = pl.program_id(2)

    @pl.when(k == 0)
    def _():
        acc_ref[...] = jnp.zeros_like(acc_ref)

    acc_ref[...] += jnp.dot(x_ref[...], wt_ref[...],
                            preferred_element_type=jnp.float32)

    @pl.when(k == pl.num_programs(2) - 1)
    def _():
        # Bias add + output cast only in the epilogue (not once per K step).
        o_ref[...] = (acc_ref[...] + b_ref[...]).astype(o_ref.dtype)


@functools.partial(
    jax.jit, static_argnames=("dim_out", "tk", "tn", "tm_max", "out_dtype"))
def decoder_forward(x, weight_t_p, bias_p, *, dim_out, tk, tn,
                    tm_max=512, out_dtype=None):
    """y = x @ W^T + b with a tiled Pallas TPU matmul (bf16 MXU, f32 accum).

    x:          (M, dim_in)  any float dtype; cast to the weight dtype here.
    weight_t_p: (Kp, Np)     pre-transposed / cast / padded at init time.
    bias_p:     (1, Np)      float32, padded at init time.
    """
    M, K = x.shape
    Kp, Np = weight_t_p.shape
    assert K <= Kp and dim_out <= Np, "params not prepared for this input"

    compute_dtype = weight_t_p.dtype           # bf16 by default
    if out_dtype is None:
        out_dtype = compute_dtype              # bf16 logits halve the writeback
    x = x.astype(compute_dtype)

    # tm: sublane-packed for the compute dtype and sized to minimize M padding.
    # Prefill uses up to tm_max so the K*N weight is re-streamed fewer times;
    # decode clamps to a small packed tile.
    pack = _sublane_pack(compute_dtype)
    n_i = -(-M // tm_max)
    tm = min(_round_up(-(-M // n_i), pack), tm_max)
    Mp = tm * n_i

    xp = x if (Mp, Kp) == (M, K) else jnp.pad(x, ((0, Mp - M), (0, Kp - K)))

    grid = (Mp // tm, Np // tn, Kp // tk)

    # Weight stream: 3-deep buffering in the decode (small-M, bandwidth-bound)
    # regime to hide HBM latency bubbles at k-step boundaries.
    w_buffers = 2
    w_spec_kwargs = {}
    if tm <= 64 and grid[2] >= 3:
        w_buffers = 3
        w_spec_kwargs["pipeline_mode"] = pl.Buffered(3)

    in_bytes = jnp.dtype(compute_dtype).itemsize
    out_bytes = jnp.dtype(out_dtype).itemsize
    tile_bytes = (2 * tm * tk * in_bytes            # x (double-buffered)
                  + w_buffers * tk * tn * in_bytes  # W^T
                  + 2 * tn * 4                      # bias (double-buffered)
                  + 2 * tm * tn * out_bytes         # output (double-buffered)
                  + tm * tn * 4)                    # f32 accumulator scratch
    vmem_limit = max(min(tile_bytes + (4 << 20), _vmem_budget_bytes()),
                     16 << 20)

    # Actual streamed bytes: weight re-read once per i block, x once per j
    # block, bias per (i, j), output written once.
    cost = pl.CostEstimate(
        flops=2 * Mp * Np * Kp,
        transcendentals=0,
        bytes_accessed=(grid[0] * Kp * Np * in_bytes
                        + grid[1] * Mp * Kp * in_bytes
                        + grid[0] * grid[1] * Np * 4
                        + Mp * Np * out_bytes),
    )

    out_p = pl.pallas_call(
        _linear_kernel,
        out_shape=jax.ShapeDtypeStruct((Mp, Np), out_dtype),
        grid=grid,
        in_specs=[
            pl.BlockSpec((tm, tk), lambda i, j, k: (i, k)),                    # x
            pl.BlockSpec((tk, tn), lambda i, j, k: (k, j), **w_spec_kwargs),   # W^T
            pl.BlockSpec((1, tn), lambda i, j, k: (0, j)),                     # bias
        ],
        out_specs=pl.BlockSpec((tm, tn), lambda i, j, k: (i, j)),
        scratch_shapes=[pltpu.VMEM((tm, tn), jnp.float32)],
        compiler_params=pltpu.CompilerParams(
            dimension_semantics=("parallel", "parallel", "arbitrary"),
            vmem_limit_bytes=vmem_limit,
        ),
        cost_estimate=cost,
    )(xp, weight_t_p, bias_p)

    if (Mp, Np) == (M, dim_out):
        return out_p
    return out_p[:M, :dim_out]


def decoder_apply(params, x, **kwargs):
    """Convenience wrapper: y = Decoder(x) with pre-packed params."""
    return decoder_forward(x, params["weight_t_p"], params["bias_p"],
                           dim_out=params["dim_out"], tk=params["tk"],
                           tn=params["tn"], **kwargs)


if __name__ == "__main__":
    # Small shapes consistent with the module: batch=8, dim_in=32, dim_out=16.
    # (For real decoders with vocab-sized dim_out the same code tiles at
    #  tm<=512, tn=512, tk=1024 in bf16.)
    batch, dim_in, dim_out = 8, 32, 16

    key = jax.random.PRNGKey(0)
    kx, kw, kb = jax.random.split(key, 3)

    x = jax.random.normal(kx, (batch, dim_in), dtype=jnp.float32)
    # nn.Linear-style init in the PyTorch (dim_out, dim_in) layout ...
    bound = 1.0 / (dim_in ** 0.5)
    weight = jax.random.uniform(kw, (dim_out, dim_in), dtype=jnp.float32,
                                minval=-bound, maxval=bound)
    bias = jax.random.uniform(kb, (dim_out,), dtype=jnp.float32,
                              minval=-bound, maxval=bound)

    # ... transposed, cast to bf16 and padded ONCE at parameter-init time.
    params = prepare_decoder_params(weight, bias, param_dtype=jnp.bfloat16)

    y = decoder_apply(params, x)
    jax.block_until_ready(y)

    # Correctness check against the plain f32 JAX reference (bf16 MXU operands
    # + bf16 logits output => matching tolerances).
    y_ref = x @ weight.T + bias
    assert y.shape == (batch, dim_out)
    assert y.dtype == jnp.dtype(jnp.bfloat16)
    assert jnp.allclose(y.astype(jnp.float32), y_ref, atol=5e-2, rtol=5e-2)

    print("KERNEL_OK")
</pallas_src>

<mosaic_0001>
module attributes {stable_mosaic.version = 11 : i64} {
  func.func @_linear_kernel(%arg0: i32, %arg1: i32, %arg2: i32, %arg3: memref<16x128xbf16, #tpu.memory_space<vmem>>, %arg4: memref<128x128xbf16, #tpu.memory_space<vmem>>, %arg5: memref<1x128xf32, #tpu.memory_space<vmem>>, %arg6: memref<16x128xbf16, #tpu.memory_space<vmem>>, %arg7: memref<16x128xf32, #tpu.memory_space<vmem>>) attributes {dimension_semantics = [#tpu.dimension_semantics<parallel>, #tpu.dimension_semantics<parallel>, #tpu.dimension_semantics<arbitrary>], iteration_bounds = array<i64: 1, 1, 1>, scalar_prefetch = 0 : i64, scratch_operands = 1 : i64, tpu.core_type = #tpu.core_type<tc>, window_params = [{transform_indices = @transform_0, window_bounds = array<i64: 16, 128>}, {transform_indices = @transform_1, window_bounds = array<i64: 128, 128>}, {transform_indices = @transform_2, window_bounds = array<i64: 1, 128>}, {transform_indices = @transform_3, window_bounds = array<i64: 16, 128>}]} {
    %c0_i32 = arith.constant 0 : i32
    %0 = arith.cmpi eq, %arg2, %c0_i32 : i32
    %1 = arith.extui %0 : i1 to i32
    %c0_i32_0 = arith.constant 0 : i32
    %2 = arith.cmpi ne, %1, %c0_i32_0 : i32
    scf.if %2 {
      %cst_10 = arith.constant 0.000000e+00 : f32
      %12 = vector.broadcast %cst_10 : f32 to vector<16x128xf32>
      %c0_11 = arith.constant 0 : index
      %c0_12 = arith.constant 0 : index
      %13 = vector.load %arg7[%c0_11, %c0_12] : memref<16x128xf32, #tpu.memory_space<vmem>>, vector<16x128xf32>
      tpu.vector_store %arg7[%c0_11, %c0_12], %12 {strides = array<i32>} : memref<16x128xf32, #tpu.memory_space<vmem>>, vector<16x128xf32>,
    } else {
    }
    %c0 = arith.constant 0 : index
    %c0_1 = arith.constant 0 : index
    %3 = vector.load %arg7[%c0, %c0_1] : memref<16x128xf32, #tpu.memory_space<vmem>>, vector<16x128xf32>
    %c0_2 = arith.constant 0 : index
    %c0_3 = arith.constant 0 : index
    %4 = vector.load %arg3[%c0_2, %c0_3] : memref<16x128xbf16, #tpu.memory_space<vmem>>, vector<16x128xbf16>
    %c0_4 = arith.constant 0 : index
    %c0_5 = arith.constant 0 : index
    %5 = vector.load %arg4[%c0_4, %c0_5] : memref<128x128xbf16, #tpu.memory_space<vmem>>, vector<128x128xbf16>
    %cst = arith.constant dense<0.000000e+00> : vector<16x128xf32>
    %6 = tpu.matmul %4, %5, %cst {dimension_numbers = #tpu.dot_dimension_numbers<[1], [0], [0], [1], [0, 0, 1, 1], [], []>} : vector<16x128xbf16>, vector<128x128xbf16>, vector<16x128xf32> -> vector<16x128xf32>
    %7 = arith.addf %3, %6 : vector<16x128xf32>
    %c0_6 = arith.constant 0 : index
    %c0_7 = arith.constant 0 : index
    %8 = vector.load %arg7[%c0_6, %c0_7] : memref<16x128xf32, #tpu.memory_space<vmem>>, vector<16x128xf32>
    tpu.vector_store %arg7[%c0_6, %c0_7], %7 {strides = array<i32>} : memref<16x128xf32, #tpu.memory_space<vmem>>, vector<16x128xf32>,
    %c0_i32_8 = arith.constant 0 : i32
    %9 = arith.cmpi eq, %arg2, %c0_i32_8 : i32
    %10 = arith.extui %9 : i1 to i32
    %c0_i32_9 = arith.constant 0 : i32
    %11 = arith.cmpi ne, %10, %c0_i32_9 : i32
    scf.if %11 {
      %c0_10 = arith.constant 0 : index
      %c0_11 = arith.constant 0 : index
      %12 = vector.load %arg7[%c0_10, %c0_11] : memref<16x128xf32, #tpu.memory_space<vmem>>, vector<16x128xf32>
      %c0_12 = arith.constant 0 : index
      %c0_13 = arith.constant 0 : index
      %13 = vector.load %arg5[%c0_12, %c0_13] : memref<1x128xf32, #tpu.memory_space<vmem>>, vector<1x128xf32>
      %14 = vector.broadcast %13 : vector<1x128xf32> to vector<16x128xf32>
      %15 = arith.addf %12, %14 : vector<16x128xf32>
      %16 = arith.truncf %15 : vector<16x128xf32> to vector<16x128xbf16>
      %c0_14 = arith.constant 0 : index
      %c0_15 = arith.constant 0 : index
      %17 = vector.load %arg6[%c0_14, %c0_15] : memref<16x128xbf16, #tpu.memory_space<vmem>>, vector<16x128xbf16>
      tpu.vector_store %arg6[%c0_14, %c0_15], %16 {strides = array<i32>} : memref<16x128xbf16, #tpu.memory_space<vmem>>, vector<16x128xbf16>,
    } else {
    }
    return
  }
  func.func @transform_0(%arg0: i32, %arg1: i32, %arg2: i32) -> (i32, i32) {
    %c0_i32 = arith.constant 0 : i32
    return %arg0, %arg2 : i32, i32
  }
  func.func @transform_1(%arg0: i32, %arg1: i32, %arg2: i32) -> (i32, i32) {
    %c0_i32 = arith.constant 0 : i32
    return %arg2, %arg1 : i32, i32
  }
  func.func @transform_2(%arg0: i32, %arg1: i32, %arg2: i32) -> (i32, i32) {
    %c0_i32 = arith.constant 0 : i32
    %c0_i32_0 = arith.constant 0 : i32
    return %c0_i32, %arg1 : i32, i32
  }
  func.func @transform_3(%arg0: i32, %arg1: i32, %arg2: i32) -> (i32, i32) {
    %c0_i32 = arith.constant 0 : i32
    return %arg0, %arg1 : i32, i32
  }
}

</mosaic_0001>

<bundles_post_ra>
// kernel: decoder_forward.1
= control target key start
LH: loop header
LB: loop body
LE: loop exit
PB: predicated region body
PF: predicated region fallthrough
CT: control target
= control target key end

     0   :  { %8 = vsyncpa [#allocation4], 0  ;;  %s269_s12 = smov [#allocation3]   ;;  %s315_s0 = inlined_call_operand.vmem [shape: bf16[16,128], index: 0, kind: input, shape index: {}]   ;;  %s316_s1 = inlined_call_operand.hbm [shape: bf16[128,128], index: 1, kind: input, shape index: {}]   ;;  %s317_s2 = inlined_call_operand.vmem [shape: f32[1,128], index: 2, kind: input, shape index: {}]   ;;  %s318_s3 = inlined_call_operand.vmem [shape: bf16[16,128], index: 3, kind: output, shape index: {}]  }
   0x1   :  { %s16_s13 = sshll.u32 %s269_s12, 4  ;;  %s245_s16 = scalar_lea.hbm %s316_s1, 1024  ;;  %s17_s13 = int_to_ptr.vmem [resolvable:$true] %s16_s13 }
   0x2   :  { %p246_p0 = scmp.ne.s32.totalorder %s316_s1, %s245_s16  ;;  %p249_p1 = scmp.lt.u32.totalorder %s245_s16, %s316_s1 }
   0x4   :  { %p251_p2 = pnand %p249_p1, %p246_p0 }
   0x6   :  { %254 = shalt.err (!%p251_p2)
}
   0x7   :  { %s255_s21 = scalar_lea.vmem %s17_s13, 1024  ;;  %p260_p4 = scmp.lt.s32.totalorder %s17_s13, %s17_s13 }
   0x8   :  { %p256_p3 = scmp.ne.s32.totalorder %s17_s13, %s255_s21  ;;  %p261_p5 = scmp.lt.s32.totalorder %s255_s21, %s255_s21 }
   0xa   :  { %p262_p6 = por %p261_p5, %p260_p4 }
   0xc   :  { %p263_p7 = pnand %p262_p6, %p256_p3 }
   0xe   :  { %266 = shalt.err (!%p263_p7)
}
   0xf   :  { %s270_s22 = smov 64   ;;  %s271_s23 = smov 4  }
  0x10   :  { %22 = dma.hbm_to_vmem [thread:$0]  %s316_s1, 1024, %s17_s13, [#allocation4], %s270_s22, %s270_s22, %s271_s23  }
  0x11   :  { %267 = dma.done.wait [#allocation4], 1024  }
  0x12   :  { %268 = vsyncadd [#allocation4], 4294966272  ;;  %v272_v0 = vmov 0.0   ;;  %vm273_vm0 = vmmov 0   ;;  %v236_v1 = vld [vmem:[#allocation3] sm:$0xff]   ;;  %v237_v2 = vld [vmem:[#allocation3 + $0x8] sm:$0xff]  }
  0x13   :  { %211 = vmatprep.subr.bf16.mxu0 %v272_v0  ;;  %227 = vmatprep.mubr.msk.bf16.mxu0 %vm273_vm0, %v272_v0  ;;  %v238_v3 = vld [vmem:[#allocation3 + $0x10] sm:$0xff]   ;;  %v239_v4 = vld [vmem:[#allocation3 + $0x18] sm:$0xff]   ;;  %v240_v5 = vld [vmem:[#allocation3 + $0x20] sm:$0xff]  }
  0x14   :  { %212 = vmatpush3.bf16.msra.mxu0 %v236_v1  ;;  %v241_v6 = vld [vmem:[#allocation3 + $0x28] sm:$0xff]   ;;  %v242_v7 = vld [vmem:[#allocation3 + $0x30] sm:$0xff]   ;;  %v243_v8 = vld [vmem:[#allocation3 + $0x38] sm:$0xff]  }
  0x15   :  { %213 = vmatprep.subr.bf16.mxu0 %v272_v0  ;;  %v244_v9 = vld [vmem:[%s315_s0] sm:$0xff]  }
  0x16   :  { %v192_v11 = vld [vmem:[%s317_s2] ss:$0 sm:$0xff] }
  0x18   :  { %214 = vmatpush3.bf16.msra.mxu0 %v237_v2 }
  0x19   :  { %215 = vmatprep.subr.bf16.mxu0 %v272_v0 }
  0x1c   :  { %216 = vmatpush3.bf16.msra.mxu0 %v238_v3 }
  0x1d   :  { %217 = vmatprep.subr.bf16.mxu0 %v272_v0 }
  0x20   :  { %218 = vmatpush3.bf16.msra.mxu0 %v239_v4 }
  0x21   :  { %219 = vmatprep.subr.bf16.mxu0 %v272_v0 }
  0x24   :  { %220 = vmatpush3.bf16.msra.mxu0 %v240_v5 }
  0x25   :  { %221 = vmatprep.subr.bf16.mxu0 %v272_v0 }
  0x28   :  { %222 = vmatpush3.bf16.msra.mxu0 %v241_v6 }
  0x29   :  { %223 = vmatprep.subr.bf16.mxu0 %v272_v0 }
  0x2c   :  { %224 = vmatpush3.bf16.msra.mxu0 %v242_v7 }
  0x2d   :  { %225 = vmatprep.subr.bf16.mxu0 %v272_v0 }
  0x30   :  { %226 = vmatpush3.bf16.msra.mxu0 %v243_v8 }
  0x33   :  { %228 = vmatmul.mubr.bf16.vlgmr.msra.gmra.mrb[0].mxu0 %v244_v9 }
 0x106   :  { %v143_v10 = vpop.f32.mrb[0].mxu0 }
 0x107   :  { %v229_v12 = vpop.f32.mrb[1].mxu0  ;;  %v166_v14 = vadd.f32 %v192_v11, %v143_v10 }
 0x108   :  { %v146_v13 = vpop.f32.mrb[2].mxu0 }
 0x109   :  { %v167_v15 = vadd.f32 %v192_v11, %v146_v13  ;;  %v230_v16 = vpop.f32.mrb[3].mxu0 }
 0x10b   :  { %v200_v17 = vpack.c.bf16 %v167_v15, %v166_v14 }
 0x10d   :  { %201 = vst [vmem:[%s318_s3] sm:$0xff] %v200_v17  }
 0x10e   :  { %182 = vsyncpa [#allocation4], 1 }

</bundles_post_ra>
